<compile_context>
chip_gen: v6e
topology: v6e:2x2x1
jax: 0.10.0
libtpu: 0.0.40
codegen_flags: <defaults>
</compile_context>

<pallas_src>
import functools

import jax
import jax.numpy as jnp
from jax.experimental import pallas as pl
from jax.experimental.pallas import tpu as pltpu

_LANES = 128
_SUBLANES = 8


def _heatmap_loss_kernel(pred_ref, gt_ref, mask_ref, out_ref, *,
                         total_rows, block_rows):
    p = pred_ref[...].astype(jnp.float32)
    g = gt_ref[...].astype(jnp.float32)
    m = mask_ref[...].astype(jnp.float32)
    d = p - g
    val = d * d * m

    # Static branch: only traced when the grid is ragged (last block window
    # extends past the end of the array -> zero those rows; jnp.where also
    # squashes any garbage/NaN from the out-of-bounds read).
    if total_rows % block_rows != 0:
        row0 = pl.program_id(0) * block_rows
        rows = row0 + jax.lax.broadcasted_iota(jnp.int32, val.shape, 0)
        val = jnp.where(rows < total_rows, val, 0.0)

    # Static branch: only traced for tiny inputs where the (full-array) block
    # has a row count that is not a multiple of 8.
    if block_rows % _SUBLANES != 0:
        pad_rows = (-block_rows) % _SUBLANES
        val = jnp.concatenate(
            [val, jnp.zeros((pad_rows, _LANES), jnp.float32)], axis=0)

    # Fold (block_rows, 128) -> (8, 128) with pure VPU vreg adds; no cross-lane
    # (XLU) reduction inside the pipelined loop.
    out_ref[...] = val.reshape(-1, _SUBLANES, _LANES).sum(axis=0)


def heatmap_loss(pred, gt, mask, *, target_block_bytes=4 * 1024 * 1024):
    """Pallas implementation of HeatmapLoss.forward.

    pred, gt, mask: arrays of shape (B, C, H, W). Returns a scalar f32.
    """
    assert pred.shape == gt.shape == mask.shape
    B, C, H, W = pred.shape
    n_elems = B * C * H * W

    # Lane-dense view: (M, 128).  Reshape of contiguous NCHW data is free.
    p = pred.reshape(-1)
    g = gt.reshape(-1)
    m = mask.reshape(-1)

    n_pad = (-n_elems) % _LANES
    if n_pad:
        # Rare fallback (element count not a multiple of 128): zero-pad the
        # flat arrays; padded entries contribute (0-0)^2 * 0 == 0.
        p = jnp.pad(p, (0, n_pad))
        g = jnp.pad(g, (0, n_pad))
        m = jnp.pad(m, (0, n_pad))
    total_rows = (n_elems + n_pad) // _LANES
    p = p.reshape(total_rows, _LANES)
    g = g.reshape(total_rows, _LANES)
    m = m.reshape(total_rows, _LANES)

    itemsize = jnp.dtype(pred.dtype).itemsize
    # Large row tile (~target_block_bytes per input block), multiple of 8,
    # clamped to the full array for small inputs.
    block_rows = max(_SUBLANES, target_block_bytes // (_LANES * itemsize))
    block_rows = (block_rows // _SUBLANES) * _SUBLANES
    block_rows = min(block_rows, total_rows)

    num_blocks = -(-total_rows // block_rows)  # ceil div, static Python int

    # Scoped-VMEM budget: 3 inputs x 2 pipeline buffers x block + headroom,
    # capped well under v7x's 64 MiB physical VMEM per TensorCore.
    block_bytes = block_rows * _LANES * itemsize
    vmem_limit = 3 * 2 * block_bytes + (8 << 20)
    vmem_limit = int(min(max(vmem_limit, 16 << 20), 48 << 20))

    kernel = functools.partial(
        _heatmap_loss_kernel, total_rows=total_rows, block_rows=block_rows)

    in_spec = pl.BlockSpec((block_rows, _LANES), lambda i: (i, 0))
    partials = pl.pallas_call(
        kernel,
        out_shape=jax.ShapeDtypeStruct(
            (_SUBLANES, num_blocks * _LANES), jnp.float32),
        grid=(num_blocks,),
        in_specs=[in_spec, in_spec, in_spec],
        out_specs=pl.BlockSpec((_SUBLANES, _LANES), lambda i: (0, i)),
        compiler_params=pltpu.CompilerParams(
            dimension_semantics=("parallel",),
            vmem_limit_bytes=vmem_limit,
        ),
    )(p, g, m)

    # Tiny final reduction in XLA; the global mean equals the chained per-dim
    # means since every dim is reduced.
    return jnp.sum(partials) / jnp.float32(n_elems)


def heatmap_loss_ref(pred, gt, mask):
    loss = (pred - gt) ** 2 * mask
    return jnp.mean(
        jnp.mean(jnp.mean(jnp.mean(loss, axis=3), axis=2), axis=1), axis=0)


if __name__ == "__main__":
    key = jax.random.PRNGKey(0)
    k1, k2, k3 = jax.random.split(key, 3)

    B, C, H, W = 2, 4, 16, 16
    pred = jax.random.normal(k1, (B, C, H, W), dtype=jnp.float32)
    gt = jax.random.normal(k2, (B, C, H, W), dtype=jnp.float32)
    mask = (jax.random.uniform(k3, (B, C, H, W)) > 0.3).astype(jnp.float32)

    out = heatmap_loss(pred, gt, mask)
    out = jax.block_until_ready(out)

    ref = heatmap_loss_ref(pred, gt, mask)
    assert jnp.allclose(out, ref, rtol=1e-5, atol=1e-5), (out, ref)

    print("KERNEL_OK")
</pallas_src>

<mosaic_0001>
module attributes {stable_mosaic.version = 11 : i64} {
  func.func @_heatmap_loss_kernel(%arg0: i32, %arg1: memref<16x128xf32, #tpu.memory_space<vmem>>, %arg2: memref<16x128xf32, #tpu.memory_space<vmem>>, %arg3: memref<16x128xf32, #tpu.memory_space<vmem>>, %arg4: memref<8x128xf32, #tpu.memory_space<vmem>>) attributes {dimension_semantics = [#tpu.dimension_semantics<parallel>], iteration_bounds = array<i64: 1>, scalar_prefetch = 0 : i64, scratch_operands = 0 : i64, tpu.core_type = #tpu.core_type<tc>, window_params = [{transform_indices = @transform_0, window_bounds = array<i64: 16, 128>}, {transform_indices = @transform_1, window_bounds = array<i64: 16, 128>}, {transform_indices = @transform_2, window_bounds = array<i64: 16, 128>}, {transform_indices = @transform_3, window_bounds = array<i64: 8, 128>}]} {
    %c0 = arith.constant 0 : index
    %c0_0 = arith.constant 0 : index
    %0 = vector.load %arg1[%c0, %c0_0] : memref<16x128xf32, #tpu.memory_space<vmem>>, vector<16x128xf32>
    %c0_1 = arith.constant 0 : index
    %c0_2 = arith.constant 0 : index
    %1 = vector.load %arg2[%c0_1, %c0_2] : memref<16x128xf32, #tpu.memory_space<vmem>>, vector<16x128xf32>
    %c0_3 = arith.constant 0 : index
    %c0_4 = arith.constant 0 : index
    %2 = vector.load %arg3[%c0_3, %c0_4] : memref<16x128xf32, #tpu.memory_space<vmem>>, vector<16x128xf32>
    %3 = arith.subf %0, %1 : vector<16x128xf32>
    %4 = arith.mulf %3, %3 : vector<16x128xf32>
    %5 = arith.mulf %4, %2 : vector<16x128xf32>
    %6 = vector.shape_cast %5 : vector<16x128xf32> to vector<2x8x128xf32>
    %cst = arith.constant dense<0.000000e+00> : vector<8x128xf32>
    %7 = vector.multi_reduction <add>, %6, %cst [0] : vector<2x8x128xf32> to vector<8x128xf32>
    %c0_5 = arith.constant 0 : index
    %c0_6 = arith.constant 0 : index
    %8 = vector.load %arg4[%c0_5, %c0_6] : memref<8x128xf32, #tpu.memory_space<vmem>>, vector<8x128xf32>
    tpu.vector_store %arg4[%c0_5, %c0_6], %7 {strides = array<i32>} : memref<8x128xf32, #tpu.memory_space<vmem>>, vector<8x128xf32>,
    return
  }
  func.func @transform_0(%arg0: i32) -> (i32, i32) {
    %c0_i32 = arith.constant 0 : i32
    %c0_i32_0 = arith.constant 0 : i32
    return %arg0, %c0_i32 : i32, i32
  }
  func.func @transform_1(%arg0: i32) -> (i32, i32) {
    %c0_i32 = arith.constant 0 : i32
    %c0_i32_0 = arith.constant 0 : i32
    return %arg0, %c0_i32 : i32, i32
  }
  func.func @transform_2(%arg0: i32) -> (i32, i32) {
    %c0_i32 = arith.constant 0 : i32
    %c0_i32_0 = arith.constant 0 : i32
    return %arg0, %c0_i32 : i32, i32
  }
  func.func @transform_3(%arg0: i32) -> (i32, i32) {
    %c0_i32 = arith.constant 0 : i32
    %c0_i32_0 = arith.constant 0 : i32
    return %c0_i32, %arg0 : i32, i32
  }
}

</mosaic_0001>

<bundles_post_ra>
// kernel: tpu_custom_call.1
= control target key start
LH: loop header
LB: loop body
LE: loop exit
PB: predicated region body
PF: predicated region fallthrough
CT: control target
= control target key end

     0   :  { %8 = vsyncpa [#allocation3], 0  ;;  %s216_s0 = inlined_call_operand.hbm [shape: f32[16,128], index: 0, kind: input, shape index: {}]   ;;  %s217_s1 = inlined_call_operand.hbm [shape: f32[16,128], index: 1, kind: input, shape index: {}]   ;;  %s218_s2 = inlined_call_operand.hbm [shape: f32[16,128], index: 2, kind: input, shape index: {}]   ;;  %s219_s3 = inlined_call_operand.hbm [shape: f32[8,128], index: 3, kind: output, shape index: {}]  }
   0x1   :  { %9 = vsyncpa [#allocation6], 0 }
   0x2   :  { %10 = vsyncpa [#allocation4], 0  ;;  %s178_s12 = smov [#allocation5]   ;;  %s179_s14 = smov [#allocation2]  }
   0x3   :  { %s28_s13 = sshll.u32 %s178_s12, 4  ;;  %s16_s15 = sshll.u32 %s179_s14, 4  ;;  %s29_s13 = int_to_ptr.vmem [resolvable:$true] %s28_s13  ;;  %s17_s15 = int_to_ptr.vmem [resolvable:$true] %s16_s15 }
   0x4   :  { %s100_s16 = scalar_lea.vmem %s29_s13, 256  ;;  %p105_p1 = scmp.lt.s32.totalorder %s29_s13, %s29_s13 }
   0x5   :  { %p101_p0 = scmp.ne.s32.totalorder %s29_s13, %s100_s16  ;;  %p106_p2 = scmp.lt.s32.totalorder %s100_s16, %s100_s16 }
   0x7   :  { %p107_p3 = por %p106_p2, %p105_p1 }
   0x9   :  { %p108_p4 = pnand %p107_p3, %p101_p0 }
   0xb   :  { %111 = shalt.err (!%p108_p4)
}
   0xc   :  { %s180_s17 = smov 128   ;;  %s181_s18 = smov 8  }
   0xd   :  { %34 = dma.hbm_to_vmem [thread:$0]  %s217_s1, 256, %s29_s13, [#allocation6], %s180_s17, %s180_s17, %s181_s18  }
   0xe   :  { %s120_s21 = scalar_lea.vmem %s17_s15, 256  ;;  %p125_p6 = scmp.lt.s32.totalorder %s17_s15, %s17_s15 }
   0xf   :  { %p121_p5 = scmp.ne.s32.totalorder %s17_s15, %s120_s21  ;;  %p126_p7 = scmp.lt.s32.totalorder %s120_s21, %s120_s21 }
  0x11   :  { %p127_p8 = por %p126_p7, %p125_p6 }
  0x13   :  { %p128_p9 = pnand %p127_p8, %p121_p5 }
  0x15   :  { %131 = shalt.err (!%p128_p9)
}
  0x16   :  { %22 = dma.hbm_to_vmem [thread:$0]  %s216_s0, 256, %s17_s15, [#allocation3], %s180_s17, %s180_s17, %s181_s18  }
  0x17   :  { %s182_s24 = smov [#allocation7]  }
  0x18   :  { %s40_s25 = sshll.u32 %s182_s24, 4  ;;  %s41_s25 = int_to_ptr.vmem [resolvable:$true] %s40_s25 }
  0x19   :  { %s140_s26 = scalar_lea.vmem %s41_s25, 256  ;;  %p145_p11 = scmp.lt.s32.totalorder %s41_s25, %s41_s25 }
  0x1a   :  { %p141_p10 = scmp.ne.s32.totalorder %s41_s25, %s140_s26  ;;  %p146_p12 = scmp.lt.s32.totalorder %s140_s26, %s140_s26 }
  0x1c   :  { %p147_p13 = por %p146_p12, %p145_p11 }
  0x1e   :  { %p148_p0 = pnand %p147_p13, %p141_p10 }
  0x20   :  { %151 = shalt.err (!%p148_p0)
}
  0x21   :  { %46 = dma.hbm_to_vmem [thread:$0]  %s218_s2, 256, %s41_s25, [#allocation6], %s180_s17, %s180_s17, %s181_s18  }
  0x22   :  { %172 = dma.done.wait [#allocation3], 256  }
  0x23   :  { %173 = vsyncadd [#allocation3], 4294967040 }
  0x24   :  { %174 = dma.done.wait [#allocation6], 512  }
  0x25   :  { %175 = vsyncadd [#allocation6], 4294966784  ;;  %v56_v0 = vld [vmem:[#allocation2] sm:$0xff]  ;;  %v57_v1 = vld [vmem:[#allocation2 + $0x8] sm:$0xff]  ;;  %s183_s0 = smov [#allocation8]  }
  0x26   :  { %v58_v2 = vld [vmem:[#allocation5] sm:$0xff]  ;;  %v59_v3 = vld [vmem:[#allocation5 + $0x8] sm:$0xff]  ;;  %v60_v5 = vld [vmem:[#allocation7] sm:$0xff]  ;;  %s76_s28 = sshll.u32 %s183_s0, 4  ;;  %s77_s28 = int_to_ptr.vmem [resolvable:$true] %s76_s28 }
  0x27   :  { %v62_v4 = vsub.f32 %v56_v0, %v58_v2  ;;  %v63_v6 = vsub.f32 %v57_v1, %v59_v3  ;;  %v61_v7 = vld [vmem:[#allocation7 + $0x8] sm:$0xff]  ;;  %s152_s2 = scalar_lea.vmem %s77_s28, 128  ;;  %p157_p2 = scmp.lt.s32.totalorder %s77_s28, %s77_s28 }
  0x28   :  { %p153_p1 = scmp.ne.s32.totalorder %s77_s28, %s152_s2  ;;  %p158_p3 = scmp.lt.s32.totalorder %s152_s2, %s152_s2 }
  0x29   :  { %v64_v8 = vmul.f32 %v62_v4, %v62_v4  ;;  %v65_v9 = vmul.f32 %v63_v6, %v63_v6 }
  0x2a   :  { %p159_p4 = por %p158_p3, %p157_p2 }
  0x2b   :  { %v66_v10 = vmul.f32 %v64_v8, %v60_v5  ;;  %v67_v11 = vmul.f32 %v65_v9, %v61_v7 }
  0x2c   :  { %p160_p5 = pnand %p159_p4, %p153_p1 }
  0x2d   :  { %v68_v12 = vadd.f32 %v67_v11, %v66_v10 }
  0x2f   :  { %69 = vst [vmem:[#allocation8] sm:$0xff] %v68_v12 }
  0x30   :  { %163 = shalt.err (!%p160_p5)
}
  0x31   :  { %79 = dma.vmem_to_hbm [thread:$0]  %s77_s28, 128, %s219_s3, [#allocation4]  }
  0x32   :  { %176 = dma.done.wait [#allocation4], 128  }
  0x33   :  { %177 = vsyncadd [#allocation4], 4294967168 }
  0x34   :  { %83 = vsyncpa [#allocation3], 1 }
  0x35   :  { %84 = vsyncpa [#allocation6], 1 }
  0x36   :  { %85 = vsyncpa [#allocation4], 1 }

</bundles_post_ra>
